<compile_context>
chip_gen: v5e
topology: v5e:2x2
jax: 0.10.0
libtpu: 0.0.40
codegen_flags: <defaults>
</compile_context>

<pallas_src>
import math
import functools

import jax
import jax.numpy as jnp
from jax.experimental import pallas as pl
from jax.experimental.pallas import tpu as pltpu

LN_EPS = 1e-5  # torch.nn.LayerNorm default eps


def tf_layer_kernel(num_heads, batch,
                    x_ref, w_ref, vec_ref,
                    o_ref, attn_ref):
    """One fused step over the whole (M, C) slab, M = seq * batch.

    Row r of x_ref holds token (s = r // batch, b = r % batch) -- the
    contiguous flattening of the module's (S, B, C) input, so no transpose is
    needed anywhere.

    w_ref   : (C, 5C)  columns [0,3C)=fused qkv (q pre-scaled), [3C,4C)=out_proj,
              [4C,5C)=fc2(fc1) fold.
    vec_ref : (8, C)   rows 0..2 = bq*scale, bk, bv; 3 = bo; 4..7 = g1,b1,g2,b2.
    """
    x = x_ref[...]                                   # (M, C) f32
    m, c = x.shape
    dh = c // num_heads

    # Packed small params: one DMA, sliced on sublanes here (cheap).
    vecs = vec_ref[...]                              # (8, C)
    bq = vecs[0:1, :]
    bk = vecs[1:2, :]
    bv = vecs[2:3, :]
    bo = vecs[3:4, :]
    g1 = vecs[4:5, :]
    b1 = vecs[5:6, :]
    g2 = vecs[6:7, :]
    b2 = vecs[7:8, :]

    # Packed weights: one DMA; column slices are lane-aligned at production C.
    w = w_ref[...]                                   # (C, 5C)
    w_qkv = w[:, : 3 * c]
    w_o = w[:, 3 * c: 4 * c]
    w_ffn = w[:, 4 * c:]

    def layernorm(v, g, b):
        mu = jnp.mean(v, axis=-1, keepdims=True)
        var = jnp.mean((v - mu) ** 2, axis=-1, keepdims=True)
        return (v - mu) * jax.lax.rsqrt(var + LN_EPS) * g + b

    # ---- ln1 ----
    ln1 = layernorm(x, g1, b1)

    # ---- fused, pre-folded q/k/v projection: ONE (M,C) @ (C,3C) matmul ----
    # (outer Linear + MHA in_proj folded together at param-prep time; the
    #  1/sqrt(dh) attention scale is folded into the q third and bq.)
    qkv = jnp.dot(ln1, w_qkv, preferred_element_type=jnp.float32)
    q = qkv[:, :c] + bq
    k = qkv[:, c:2 * c] + bk
    v = qkv[:, 2 * c:] + bv

    # ---- in-kernel same-batch additive mask (no HBM mask input) ----
    # Row r belongs to batch element r % B; cross-batch pairs get -1e30 so
    # exp() flushes them to exactly 0.  Pure VPU iota/compare, no DMA.
    row = jax.lax.broadcasted_iota(jnp.int32, (m, m), 0)
    col = jax.lax.broadcasted_iota(jnp.int32, (m, m), 1)
    bias = jnp.where((row % batch) == (col % batch), 0.0, -1e30)
    bias = bias.astype(jnp.float32)

    # ---- multi-head attention: static head loop; head outputs are written
    #      directly into column slices of the VMEM scratch (no concatenate).
    #      (At production dh>=64 these writes are lane-aligned; if dh stays
    #      small, move heads onto sublanes or a grid axis instead.)
    nt_dims = (((1,), (1,)), ((), ()))               # q @ k^T, no explicit k.T
    for h in range(num_heads):
        lo = h * dh
        qh = q[:, lo:lo + dh]
        kh = k[:, lo:lo + dh]
        vh = v[:, lo:lo + dh]
        s = jax.lax.dot_general(qh, kh, nt_dims,
                                preferred_element_type=jnp.float32)
        s = s + bias                                 # block cross-batch attention
        p = jnp.exp(s - jnp.max(s, axis=-1, keepdims=True))
        denom = jnp.sum(p, axis=-1, keepdims=True)   # >= 1 (diagonal unmasked)
        inv = pl.reciprocal(denom, approx=True)      # EUP slot, not VPU divide
        inv = inv * (2.0 - denom * inv)              # one Newton step -> f32 accuracy
        attn_ref[:, lo:lo + dh] = (
            jnp.dot(p, vh, preferred_element_type=jnp.float32) * inv)

    # ---- MHA out_proj (+bias) + residual with the raw input ----
    ma = (jnp.dot(attn_ref[...], w_o,
                  preferred_element_type=jnp.float32) + bo + x)

    # ---- ln2, then fc2(fc1(.)) folded to ONE matmul, + ln2 residual ----
    ln2 = layernorm(ma, g2, b2)
    o_ref[...] = (jnp.dot(ln2, w_ffn,
                          preferred_element_type=jnp.float32) + ln2)


def fold_tf_layer_params(params, num_heads):
    """One-time algebraic folding + packing of the TFLayer parameters.

    Call this ONCE per parameter set (init / load time), NOT per forward:
      * outer q/k/v Linear (bias=False) followed by the MHA in_proj fold into
        a single matrix each, concatenated into one fused (C, 3C) QKV weight;
      * the MHA 1/sqrt(d_head) scale is folded into the q third and bq;
      * fc1 then fc2 (no activation in between) fold into one (C, C) matrix;
      * everything is packed into two arrays so the kernel has 3 inputs total.
    """
    c = params["g1"].shape[-1]
    dh = c // num_heads
    scale = 1.0 / math.sqrt(dh)

    wq = (params["wq_lin_t"] @ params["wq_in_t"]) * scale
    wk = params["wk_lin_t"] @ params["wk_in_t"]
    wv = params["wv_lin_t"] @ params["wv_in_t"]
    w_ffn = params["wf1_t"] @ params["wf2_t"]

    w_pack = jnp.concatenate(
        [wq, wk, wv, params["wo_t"], w_ffn], axis=1)                 # (C, 5C)
    vec_pack = jnp.concatenate(
        [params["bq"] * scale, params["bk"], params["bv"], params["bo"],
         params["g1"], params["b1"], params["g2"], params["b2"]],
        axis=0)                                                      # (8, C)
    return {"w_pack": w_pack, "vec_pack": vec_pack}


def tf_layer_pallas(x_sbc, folded, num_heads):
    """x_sbc: (S, B, C) float32, exactly like the PyTorch module input.

    `folded` comes from fold_tf_layer_params (precomputed once), so the
    per-call path is just: free reshape -> one pallas_call -> free reshape.
    """
    S, B, C = x_sbc.shape
    M = S * B
    # Contiguous flatten -- NO HBM transpose (rows stay s-major, b-minor).
    x2 = x_sbc.reshape(M, C)

    w_pack = folded["w_pack"]
    vec_pack = folded["vec_pack"]

    # Single grid step: merging the batch into the matmul M dimension beats a
    # per-batch grid on 1-TC chips at this size (one ~0.35us step instead of
    # B, one weight DMA, M=S*B sublanes of real work per matmul).
    out = pl.pallas_call(
        functools.partial(tf_layer_kernel, num_heads, B),
        out_shape=jax.ShapeDtypeStruct((M, C), jnp.float32),
        grid_spec=pltpu.PrefetchScalarGridSpec(
            num_scalar_prefetch=0,
            grid=(1,),
            in_specs=[
                pl.BlockSpec((M, C), lambda i: (0, 0)),
                pl.BlockSpec(w_pack.shape, lambda i: (0, 0)),
                pl.BlockSpec(vec_pack.shape, lambda i: (0, 0)),
            ],
            out_specs=pl.BlockSpec((M, C), lambda i: (0, 0)),
            scratch_shapes=[pltpu.VMEM((M, C), jnp.float32)],
        ),
        compiler_params=pltpu.CompilerParams(
            # "parallel" is free; lets v7x shard if this axis becomes non-trivial.
            dimension_semantics=("parallel",),
            # Explicit scoped-VMEM budget (v5e default is only 16 MiB;
            # v7x has 64 MiB physical).
            vmem_limit_bytes=32 * 1024 * 1024,
        ),
    )(x2, w_pack, vec_pack)

    # Free reshape back to the module's (S, B, C) layout.
    return out.reshape(S, B, C)


def tf_layer_reference(x_sbc, params, num_heads):
    """Pure-JAX reference with the module's (unfolded) math, for correctness."""
    S, B, C = x_sbc.shape
    dh = C // num_heads
    x = jnp.transpose(x_sbc, (1, 0, 2))                 # (B, S, C)

    def ln(v, g, b):
        mu = jnp.mean(v, axis=-1, keepdims=True)
        var = jnp.mean((v - mu) ** 2, axis=-1, keepdims=True)
        return (v - mu) / jnp.sqrt(var + LN_EPS) * g + b

    ln1 = ln(x, params["g1"], params["b1"])
    q = ln1 @ params["wq_lin_t"] @ params["wq_in_t"] + params["bq"]
    k = ln1 @ params["wk_lin_t"] @ params["wk_in_t"] + params["bk"]
    v = ln1 @ params["wv_lin_t"] @ params["wv_in_t"] + params["bv"]

    qh = q.reshape(B, S, num_heads, dh).transpose(0, 2, 1, 3)
    kh = k.reshape(B, S, num_heads, dh).transpose(0, 2, 1, 3)
    vh = v.reshape(B, S, num_heads, dh).transpose(0, 2, 1, 3)
    s = jnp.einsum("bhqd,bhkd->bhqk", qh, kh) / math.sqrt(dh)
    p = jax.nn.softmax(s, axis=-1)
    o = jnp.einsum("bhqk,bhkd->bhqd", p, vh).transpose(0, 2, 1, 3).reshape(B, S, C)

    ma = o @ params["wo_t"] + params["bo"] + x
    ln2 = ln(ma, params["g2"], params["b2"])
    out = ln2 @ params["wf1_t"] @ params["wf2_t"] + ln2
    return jnp.transpose(out, (1, 0, 2))


def init_params(key, c):
    """Deterministic synthetic init mirroring the shapes in TFLayer.__init__.

    q/k/v outer Linears are bias=False (as in the module); bq/bk/bv model the
    MHA in_proj_bias; wo_t/bo model the MHA out_proj (bias=True default).
    """
    ks = jax.random.split(key, 14)
    lin_bound = 1.0 / math.sqrt(c)                       # kaiming-uniform-ish
    xav_bound = math.sqrt(6.0 / (3 * c + c))             # xavier for MHA in_proj

    def u(k, shape, bound):
        return jax.random.uniform(k, shape, jnp.float32, -bound, bound)

    # nn.Linear stores W (out, in) and computes x @ W.T; we store W.T directly.
    return {
        "wq_lin_t": u(ks[0], (c, c), lin_bound).T,
        "wk_lin_t": u(ks[1], (c, c), lin_bound).T,
        "wv_lin_t": u(ks[2], (c, c), lin_bound).T,
        "wq_in_t":  u(ks[3], (c, c), xav_bound).T,
        "wk_in_t":  u(ks[4], (c, c), xav_bound).T,
        "wv_in_t":  u(ks[5], (c, c), xav_bound).T,
        "bq": u(ks[6], (1, c), 0.05),
        "bk": u(ks[7], (1, c), 0.05),
        "bv": u(ks[8], (1, c), 0.05),
        "wo_t": u(ks[9], (c, c), lin_bound).T,
        "bo": u(ks[10], (1, c), 0.05),
        "g1": jnp.ones((1, c), jnp.float32),
        "b1": jnp.zeros((1, c), jnp.float32),
        "g2": jnp.ones((1, c), jnp.float32),
        "b2": jnp.zeros((1, c), jnp.float32),
        "wf1_t": u(ks[11], (c, c), lin_bound).T,
        "wf2_t": u(ks[12], (c, c), lin_bound).T,
    }


if __name__ == "__main__":
    S, B, C, H = 8, 2, 32, 4                             # seq, batch, embed, heads
    key = jax.random.PRNGKey(0)
    kx, kp = jax.random.split(key)
    x = jax.random.normal(kx, (S, B, C), jnp.float32)    # (seq, batch, embed)
    params = init_params(kp, C)

    # One-time parameter folding/packing (hoisted out of the forward path).
    folded = jax.tree_util.tree_map(jax.block_until_ready,
                                    fold_tf_layer_params(params, H))

    out = jax.block_until_ready(tf_layer_pallas(x, folded, H))
    ref = jax.block_until_ready(tf_layer_reference(x, params, H))

    assert out.shape == (S, B, C)
    # Folded weights / EUP reciprocal only change f32 summation order slightly.
    assert jnp.allclose(out, ref, rtol=2e-4, atol=2e-4), "mismatch vs JAX reference"
    print("KERNEL_OK")
</pallas_src>

<mosaic_0001>
module attributes {stable_mosaic.version = 11 : i64} {
  func.func @tf_layer_kernel(%arg0: i32, %arg1: memref<16x32xf32, #tpu.memory_space<vmem>>, %arg2: memref<32x160xf32, #tpu.memory_space<vmem>>, %arg3: memref<8x32xf32, #tpu.memory_space<vmem>>, %arg4: memref<16x32xf32, #tpu.memory_space<vmem>>, %arg5: memref<16x32xf32, #tpu.memory_space<vmem>>) attributes {dimension_semantics = [#tpu.dimension_semantics<parallel>], iteration_bounds = array<i64: 1>, scalar_prefetch = 0 : i64, scratch_operands = 1 : i64, tpu.core_type = #tpu.core_type<tc>, window_params = [{pipeline_mode = #tpu.pipeline_mode<synchronous>, transform_indices = @transform_0, window_bounds = array<i64: 16, 32>}, {pipeline_mode = #tpu.pipeline_mode<synchronous>, transform_indices = @transform_1, window_bounds = array<i64: 32, 160>}, {pipeline_mode = #tpu.pipeline_mode<synchronous>, transform_indices = @transform_2, window_bounds = array<i64: 8, 32>}, {pipeline_mode = #tpu.pipeline_mode<synchronous>, transform_indices = @transform_3, window_bounds = array<i64: 16, 32>}]} {
    %c0 = arith.constant 0 : index
    %c0_0 = arith.constant 0 : index
    %0 = vector.load %arg1[%c0, %c0_0] : memref<16x32xf32, #tpu.memory_space<vmem>>, vector<16x32xf32>
    %c0_1 = arith.constant 0 : index
    %c0_2 = arith.constant 0 : index
    %1 = vector.load %arg3[%c0_1, %c0_2] : memref<8x32xf32, #tpu.memory_space<vmem>>, vector<8x32xf32>
    %2 = vector.extract_strided_slice %1 {offsets = [0, 0], sizes = [1, 32], strides = [1, 1]} : vector<8x32xf32> to vector<1x32xf32>
    %3 = vector.extract_strided_slice %1 {offsets = [1, 0], sizes = [1, 32], strides = [1, 1]} : vector<8x32xf32> to vector<1x32xf32>
    %4 = vector.extract_strided_slice %1 {offsets = [2, 0], sizes = [1, 32], strides = [1, 1]} : vector<8x32xf32> to vector<1x32xf32>
    %5 = vector.extract_strided_slice %1 {offsets = [3, 0], sizes = [1, 32], strides = [1, 1]} : vector<8x32xf32> to vector<1x32xf32>
    %6 = vector.extract_strided_slice %1 {offsets = [4, 0], sizes = [1, 32], strides = [1, 1]} : vector<8x32xf32> to vector<1x32xf32>
    %7 = vector.extract_strided_slice %1 {offsets = [5, 0], sizes = [1, 32], strides = [1, 1]} : vector<8x32xf32> to vector<1x32xf32>
    %8 = vector.extract_strided_slice %1 {offsets = [6, 0], sizes = [1, 32], strides = [1, 1]} : vector<8x32xf32> to vector<1x32xf32>
    %9 = vector.extract_strided_slice %1 {offsets = [7, 0], sizes = [1, 32], strides = [1, 1]} : vector<8x32xf32> to vector<1x32xf32>
    %c0_3 = arith.constant 0 : index
    %c0_4 = arith.constant 0 : index
    %10 = vector.load %arg2[%c0_3, %c0_4] : memref<32x160xf32, #tpu.memory_space<vmem>>, vector<32x160xf32>
    %11 = vector.extract_strided_slice %10 {offsets = [0, 0], sizes = [32, 96], strides = [1, 1]} : vector<32x160xf32> to vector<32x96xf32>
    %12 = vector.extract_strided_slice %10 {offsets = [0, 96], sizes = [32, 32], strides = [1, 1]} : vector<32x160xf32> to vector<32x32xf32>
    %13 = vector.extract_strided_slice %10 {offsets = [0, 128], sizes = [32, 32], strides = [1, 1]} : vector<32x160xf32> to vector<32x32xf32>
    %cst = arith.constant dense<0.000000e+00> : vector<16xf32>
    %14 = vector.multi_reduction <add>, %0, %cst [1] : vector<16x32xf32> to vector<16xf32>
    %15 = vector.shape_cast %14 : vector<16xf32> to vector<16x1xf32>
    %cst_5 = arith.constant 3.200000e+01 : f32
    %16 = vector.broadcast %cst_5 : f32 to vector<16x1xf32>
    %17 = arith.divf %15, %16 : vector<16x1xf32>
    %18 = vector.broadcast %17 : vector<16x1xf32> to vector<16x32xf32>
    %19 = arith.subf %0, %18 : vector<16x32xf32>
    %20 = arith.mulf %19, %19 : vector<16x32xf32>
    %cst_6 = arith.constant dense<0.000000e+00> : vector<16xf32>
    %21 = vector.multi_reduction <add>, %20, %cst_6 [1] : vector<16x32xf32> to vector<16xf32>
    %22 = vector.shape_cast %21 : vector<16xf32> to vector<16x1xf32>
    %cst_7 = arith.constant 3.200000e+01 : f32
    %23 = vector.broadcast %cst_7 : f32 to vector<16x1xf32>
    %24 = arith.divf %22, %23 : vector<16x1xf32>
    %25 = vector.broadcast %17 : vector<16x1xf32> to vector<16x32xf32>
    %26 = arith.subf %0, %25 : vector<16x32xf32>
    %cst_8 = arith.constant 9.99999974E-6 : f32
    %27 = vector.broadcast %cst_8 : f32 to vector<16x1xf32>
    %28 = arith.addf %24, %27 : vector<16x1xf32>
    %29 = math.rsqrt %28 : vector<16x1xf32>
    %30 = vector.broadcast %29 : vector<16x1xf32> to vector<16x32xf32>
    %31 = arith.mulf %26, %30 : vector<16x32xf32>
    %32 = vector.broadcast %6 : vector<1x32xf32> to vector<16x32xf32>
    %33 = arith.mulf %31, %32 : vector<16x32xf32>
    %34 = vector.broadcast %7 : vector<1x32xf32> to vector<16x32xf32>
    %35 = arith.addf %33, %34 : vector<16x32xf32>
    %cst_9 = arith.constant dense<0.000000e+00> : vector<16x96xf32>
    %36 = tpu.matmul %35, %11, %cst_9 {dimension_numbers = #tpu.dot_dimension_numbers<[1], [0], [0], [1], [0, 0, 1, 1], [], []>} : vector<16x32xf32>, vector<32x96xf32>, vector<16x96xf32> -> vector<16x96xf32>
    %37 = vector.extract_strided_slice %36 {offsets = [0, 0], sizes = [16, 32], strides = [1, 1]} : vector<16x96xf32> to vector<16x32xf32>
    %38 = vector.broadcast %2 : vector<1x32xf32> to vector<16x32xf32>
    %39 = arith.addf %37, %38 : vector<16x32xf32>
    %40 = vector.extract_strided_slice %36 {offsets = [0, 32], sizes = [16, 32], strides = [1, 1]} : vector<16x96xf32> to vector<16x32xf32>
    %41 = vector.broadcast %3 : vector<1x32xf32> to vector<16x32xf32>
    %42 = arith.addf %40, %41 : vector<16x32xf32>
    %43 = vector.extract_strided_slice %36 {offsets = [0, 64], sizes = [16, 32], strides = [1, 1]} : vector<16x96xf32> to vector<16x32xf32>
    %44 = vector.broadcast %4 : vector<1x32xf32> to vector<16x32xf32>
    %45 = arith.addf %43, %44 : vector<16x32xf32>
    %46 = tpu.iota {dimensions = array<i32: 0>} : vector<16x16xi32>
    %47 = tpu.iota {dimensions = array<i32: 1>} : vector<16x16xi32>
    %c2_i32 = arith.constant 2 : i32
    %c0_i32 = arith.constant 0 : i32
    %48 = arith.cmpi eq, %c2_i32, %c0_i32 : i32
    %c1_i32 = arith.constant 1 : i32
    %49 = arith.select %48, %c1_i32, %c2_i32 : i32
    %50 = vector.broadcast %49 : i32 to vector<16x16xi32>
    %51 = arith.remsi %46, %50 : vector<16x16xi32>
    %c0_i32_10 = arith.constant 0 : i32
    %52 = vector.broadcast %c0_i32_10 : i32 to vector<16x16xi32>
    %53 = arith.cmpi ne, %51, %52 : vector<16x16xi32>
    %c0_i32_11 = arith.constant 0 : i32
    %54 = vector.broadcast %c0_i32_11 : i32 to vector<16x16xi32>
    %55 = arith.cmpi slt, %51, %54 : vector<16x16xi32>
    %c0_i32_12 = arith.constant 0 : i32
    %56 = arith.cmpi slt, %49, %c0_i32_12 : i32
    %57 = vector.broadcast %56 : i1 to vector<16x16xi1>
    %58 = vector.broadcast %57 : vector<16x16xi1> to vector<16x16xi1>
    %59 = arith.xori %55, %58 : vector<16x16xi1>
    %60 = arith.andi %59, %53 : vector<16x16xi1>
    %61 = vector.broadcast %49 : i32 to vector<16x16xi32>
    %62 = arith.addi %51, %61 : vector<16x16xi32>
    %63 = arith.select %60, %62, %51 : vector<16x16xi1>, vector<16x16xi32>
    %c2_i32_13 = arith.constant 2 : i32
    %c0_i32_14 = arith.constant 0 : i32
    %64 = arith.cmpi eq, %c2_i32_13, %c0_i32_14 : i32
    %c1_i32_15 = arith.constant 1 : i32
    %65 = arith.select %64, %c1_i32_15, %c2_i32_13 : i32
    %66 = vector.broadcast %65 : i32 to vector<16x16xi32>
    %67 = arith.remsi %47, %66 : vector<16x16xi32>
    %c0_i32_16 = arith.constant 0 : i32
    %68 = vector.broadcast %c0_i32_16 : i32 to vector<16x16xi32>
    %69 = arith.cmpi ne, %67, %68 : vector<16x16xi32>
    %c0_i32_17 = arith.constant 0 : i32
    %70 = vector.broadcast %c0_i32_17 : i32 to vector<16x16xi32>
    %71 = arith.cmpi slt, %67, %70 : vector<16x16xi32>
    %c0_i32_18 = arith.constant 0 : i32
    %72 = arith.cmpi slt, %65, %c0_i32_18 : i32
    %73 = vector.broadcast %72 : i1 to vector<16x16xi1>
    %74 = vector.broadcast %73 : vector<16x16xi1> to vector<16x16xi1>
    %75 = arith.xori %71, %74 : vector<16x16xi1>
    %76 = arith.andi %75, %69 : vector<16x16xi1>
    %77 = vector.broadcast %65 : i32 to vector<16x16xi32>
    %78 = arith.addi %67, %77 : vector<16x16xi32>
    %79 = arith.select %76, %78, %67 : vector<16x16xi1>, vector<16x16xi32>
    %80 = arith.cmpi eq, %63, %79 : vector<16x16xi32>
    %cst_19 = arith.constant 0.000000e+00 : f32
    %cst_20 = arith.constant -1.000000e+30 : f32
    %81 = vector.broadcast %cst_19 : f32 to vector<16x16xf32>
    %82 = vector.broadcast %cst_20 : f32 to vector<16x16xf32>
    %83 = arith.select %80, %81, %82 : vector<16x16xi1>, vector<16x16xf32>
    %84 = vector.extract_strided_slice %39 {offsets = [0, 0], sizes = [16, 8], strides = [1, 1]} : vector<16x32xf32> to vector<16x8xf32>
    %85 = vector.extract_strided_slice %42 {offsets = [0, 0], sizes = [16, 8], strides = [1, 1]} : vector<16x32xf32> to vector<16x8xf32>
    %86 = vector.extract_strided_slice %45 {offsets = [0, 0], sizes = [16, 8], strides = [1, 1]} : vector<16x32xf32> to vector<16x8xf32>
    %cst_21 = arith.constant dense<0.000000e+00> : vector<16x16xf32>
    %87 = tpu.matmul %84, %85, %cst_21 {dimension_numbers = #tpu.dot_dimension_numbers<[1], [1], [0], [0], [0, 0, 1, 0], [], []>} : vector<16x8xf32>, vector<16x8xf32>, vector<16x16xf32> -> vector<16x16xf32>
    %88 = arith.addf %87, %83 : vector<16x16xf32>
    %cst_22 = arith.constant dense<0xFF800000> : vector<16xf32>
    %89 = vector.multi_reduction <maximumf>, %88, %cst_22 [1] : vector<16x16xf32> to vector<16xf32>
    %90 = vector.shape_cast %89 : vector<16xf32> to vector<16x1xf32>
    %91 = vector.broadcast %90 : vector<16x1xf32> to vector<16x16xf32>
    %92 = arith.subf %88, %91 : vector<16x16xf32>
    %93 = math.exp %92 : vector<16x16xf32>
    %cst_23 = arith.constant dense<0.000000e+00> : vector<16xf32>
    %94 = vector.multi_reduction <add>, %93, %cst_23 [1] : vector<16x16xf32> to vector<16xf32>
    %95 = vector.shape_cast %94 : vector<16xf32> to vector<16x1xf32>
    %96 = tpu.reciprocal %95 {approx = true} : vector<16x1xf32> -> vector<16x1xf32>
    %97 = arith.mulf %95, %96 : vector<16x1xf32>
    %cst_24 = arith.constant 2.000000e+00 : f32
    %98 = vector.broadcast %cst_24 : f32 to vector<16x1xf32>
    %99 = arith.subf %98, %97 : vector<16x1xf32>
    %100 = arith.mulf %96, %99 : vector<16x1xf32>
    %cst_25 = arith.constant dense<0.000000e+00> : vector<16x8xf32>
    %101 = tpu.matmul %93, %86, %cst_25 {dimension_numbers = #tpu.dot_dimension_numbers<[1], [0], [0], [1], [0, 0, 1, 1], [], []>} : vector<16x16xf32>, vector<16x8xf32>, vector<16x8xf32> -> vector<16x8xf32>
    %102 = vector.broadcast %100 : vector<16x1xf32> to vector<16x8xf32>
    %103 = arith.mulf %101, %102 : vector<16x8xf32>
    %c0_26 = arith.constant 0 : index
    %c0_27 = arith.constant 0 : index
    %104 = vector.load %arg5[%c0_26, %c0_27] : memref<16x32xf32, #tpu.memory_space<vmem>>, vector<16x8xf32>
    tpu.vector_store %arg5[%c0_26, %c0_27], %103 {strides = array<i32>} : memref<16x32xf32, #tpu.memory_space<vmem>>, vector<16x8xf32>,
    %105 = vector.extract_strided_slice %39 {offsets = [0, 8], sizes = [16, 8], strides = [1, 1]} : vector<16x32xf32> to vector<16x8xf32>
    %106 = vector.extract_strided_slice %42 {offsets = [0, 8], sizes = [16, 8], strides = [1, 1]} : vector<16x32xf32> to vector<16x8xf32>
    %107 = vector.extract_strided_slice %45 {offsets = [0, 8], sizes = [16, 8], strides = [1, 1]} : vector<16x32xf32> to vector<16x8xf32>
    %cst_28 = arith.constant dense<0.000000e+00> : vector<16x16xf32>
    %108 = tpu.matmul %105, %106, %cst_28 {dimension_numbers = #tpu.dot_dimension_numbers<[1], [1], [0], [0], [0, 0, 1, 0], [], []>} : vector<16x8xf32>, vector<16x8xf32>, vector<16x16xf32> -> vector<16x16xf32>
    %109 = arith.addf %108, %83 : vector<16x16xf32>
    %cst_29 = arith.constant dense<0xFF800000> : vector<16xf32>
    %110 = vector.multi_reduction <maximumf>, %109, %cst_29 [1] : vector<16x16xf32> to vector<16xf32>
    %111 = vector.shape_cast %110 : vector<16xf32> to vector<16x1xf32>
    %112 = vector.broadcast %111 : vector<16x1xf32> to vector<16x16xf32>
    %113 = arith.subf %109, %112 : vector<16x16xf32>
    %114 = math.exp %113 : vector<16x16xf32>
    %cst_30 = arith.constant dense<0.000000e+00> : vector<16xf32>
    %115 = vector.multi_reduction <add>, %114, %cst_30 [1] : vector<16x16xf32> to vector<16xf32>
    %116 = vector.shape_cast %115 : vector<16xf32> to vector<16x1xf32>
    %117 = tpu.reciprocal %116 {approx = true} : vector<16x1xf32> -> vector<16x1xf32>
    %118 = arith.mulf %116, %117 : vector<16x1xf32>
    %cst_31 = arith.constant 2.000000e+00 : f32
    %119 = vector.broadcast %cst_31 : f32 to vector<16x1xf32>
    %120 = arith.subf %119, %118 : vector<16x1xf32>
    %121 = arith.mulf %117, %120 : vector<16x1xf32>
    %cst_32 = arith.constant dense<0.000000e+00> : vector<16x8xf32>
    %122 = tpu.matmul %114, %107, %cst_32 {dimension_numbers = #tpu.dot_dimension_numbers<[1], [0], [0], [1], [0, 0, 1, 1], [], []>} : vector<16x16xf32>, vector<16x8xf32>, vector<16x8xf32> -> vector<16x8xf32>
    %123 = vector.broadcast %121 : vector<16x1xf32> to vector<16x8xf32>
    %124 = arith.mulf %122, %123 : vector<16x8xf32>
    %c0_33 = arith.constant 0 : index
    %c8 = arith.constant 8 : index
    %125 = vector.load %arg5[%c0_33, %c8] : memref<16x32xf32, #tpu.memory_space<vmem>>, vector<16x8xf32>
    tpu.vector_store %arg5[%c0_33, %c8], %124 {strides = array<i32>} : memref<16x32xf32, #tpu.memory_space<vmem>>, vector<16x8xf32>,
    %126 = vector.extract_strided_slice %39 {offsets = [0, 16], sizes = [16, 8], strides = [1, 1]} : vector<16x32xf32> to vector<16x8xf32>
    %127 = vector.extract_strided_slice %42 {offsets = [0, 16], sizes = [16, 8], strides = [1, 1]} : vector<16x32xf32> to vector<16x8xf32>
    %128 = vector.extract_strided_slice %45 {offsets = [0, 16], sizes = [16, 8], strides = [1, 1]} : vector<16x32xf32> to vector<16x8xf32>
    %cst_34 = arith.constant dense<0.000000e+00> : vector<16x16xf32>
    %129 = tpu.matmul %126, %127, %cst_34 {dimension_numbers = #tpu.dot_dimension_numbers<[1], [1], [0], [0], [0, 0, 1, 0], [], []>} : vector<16x8xf32>, vector<16x8xf32>, vector<16x16xf32> -> vector<16x16xf32>
    %130 = arith.addf %129, %83 : vector<16x16xf32>
    %cst_35 = arith.constant dense<0xFF800000> : vector<16xf32>
    %131 = vector.multi_reduction <maximumf>, %130, %cst_35 [1] : vector<16x16xf32> to vector<16xf32>
    %132 = vector.shape_cast %131 : vector<16xf32> to vector<16x1xf32>
    %133 = vector.broadcast %132 : vector<16x1xf32> to vector<16x16xf32>
    %134 = arith.subf %130, %133 : vector<16x16xf32>
    %135 = math.exp %134 : vector<16x16xf32>
    %cst_36 = arith.constant dense<0.000000e+00> : vector<16xf32>
    %136 = vector.multi_reduction <add>, %135, %cst_36 [1] : vector<16x16xf32> to vector<16xf32>
    %137 = vector.shape_cast %136 : vector<16xf32> to vector<16x1xf32>
    %138 = tpu.reciprocal %137 {approx = true} : vector<16x1xf32> -> vector<16x1xf32>
    %139 = arith.mulf %137, %138 : vector<16x1xf32>
    %cst_37 = arith.constant 2.000000e+00 : f32
    %140 = vector.broadcast %cst_37 : f32 to vector<16x1xf32>
    %141 = arith.subf %140, %139 : vector<16x1xf32>
    %142 = arith.mulf %138, %141 : vector<16x1xf32>
    %cst_38 = arith.constant dense<0.000000e+00> : vector<16x8xf32>
    %143 = tpu.matmul %135, %128, %cst_38 {dimension_numbers = #tpu.dot_dimension_numbers<[1], [0], [0], [1], [0, 0, 1, 1], [], []>} : vector<16x16xf32>, vector<16x8xf32>, vector<16x8xf32> -> vector<16x8xf32>
    %144 = vector.broadcast %142 : vector<16x1xf32> to vector<16x8xf32>
    %145 = arith.mulf %143, %144 : vector<16x8xf32>
    %c0_39 = arith.constant 0 : index
    %c16 = arith.constant 16 : index
    %146 = vector.load %arg5[%c0_39, %c16] : memref<16x32xf32, #tpu.memory_space<vmem>>, vector<16x8xf32>
    tpu.vector_store %arg5[%c0_39, %c16], %145 {strides = array<i32>} : memref<16x32xf32, #tpu.memory_space<vmem>>, vector<16x8xf32>,
    %147 = vector.extract_strided_slice %39 {offsets = [0, 24], sizes = [16, 8], strides = [1, 1]} : vector<16x32xf32> to vector<16x8xf32>
    %148 = vector.extract_strided_slice %42 {offsets = [0, 24], sizes = [16, 8], strides = [1, 1]} : vector<16x32xf32> to vector<16x8xf32>
    %149 = vector.extract_strided_slice %45 {offsets = [0, 24], sizes = [16, 8], strides = [1, 1]} : vector<16x32xf32> to vector<16x8xf32>
    %cst_40 = arith.constant dense<0.000000e+00> : vector<16x16xf32>
    %150 = tpu.matmul %147, %148, %cst_40 {dimension_numbers = #tpu.dot_dimension_numbers<[1], [1], [0], [0], [0, 0, 1, 0], [], []>} : vector<16x8xf32>, vector<16x8xf32>, vector<16x16xf32> -> vector<16x16xf32>
    %151 = arith.addf %150, %83 : vector<16x16xf32>
    %cst_41 = arith.constant dense<0xFF800000> : vector<16xf32>
    %152 = vector.multi_reduction <maximumf>, %151, %cst_41 [1] : vector<16x16xf32> to vector<16xf32>
    %153 = vector.shape_cast %152 : vector<16xf32> to vector<16x1xf32>
    %154 = vector.broadcast %153 : vector<16x1xf32> to vector<16x16xf32>
    %155 = arith.subf %151, %154 : vector<16x16xf32>
    %156 = math.exp %155 : vector<16x16xf32>
    %cst_42 = arith.constant dense<0.000000e+00> : vector<16xf32>
    %157 = vector.multi_reduction <add>, %156, %cst_42 [1] : vector<16x16xf32> to vector<16xf32>
    %158 = vector.shape_cast %157 : vector<16xf32> to vector<16x1xf32>
    %159 = tpu.reciprocal %158 {approx = true} : vector<16x1xf32> -> vector<16x1xf32>
    %160 = arith.mulf %158, %159 : vector<16x1xf32>
    %cst_43 = arith.constant 2.000000e+00 : f32
    %161 = vector.broadcast %cst_43 : f32 to vector<16x1xf32>
    %162 = arith.subf %161, %160 : vector<16x1xf32>
    %163 = arith.mulf %159, %162 : vector<16x1xf32>
    %cst_44 = arith.constant dense<0.000000e+00> : vector<16x8xf32>
    %164 = tpu.matmul %156, %149, %cst_44 {dimension_numbers = #tpu.dot_dimension_numbers<[1], [0], [0], [1], [0, 0, 1, 1], [], []>} : vector<16x16xf32>, vector<16x8xf32>, vector<16x8xf32> -> vector<16x8xf32>
    %165 = vector.broadcast %163 : vector<16x1xf32> to vector<16x8xf32>
    %166 = arith.mulf %164, %165 : vector<16x8xf32>
    %c0_45 = arith.constant 0 : index
    %c24 = arith.constant 24 : index
    %167 = vector.load %arg5[%c0_45, %c24] : memref<16x32xf32, #tpu.memory_space<vmem>>, vector<16x8xf32>
    tpu.vector_store %arg5[%c0_45, %c24], %166 {strides = array<i32>} : memref<16x32xf32, #tpu.memory_space<vmem>>, vector<16x8xf32>,
    %c0_46 = arith.constant 0 : index
    %c0_47 = arith.constant 0 : index
    %168 = vector.load %arg5[%c0_46, %c0_47] : memref<16x32xf32, #tpu.memory_space<vmem>>, vector<16x32xf32>
    %cst_48 = arith.constant dense<0.000000e+00> : vector<16x32xf32>
    %169 = tpu.matmul %168, %12, %cst_48 {dimension_numbers = #tpu.dot_dimension_numbers<[1], [0], [0], [1], [0, 0, 1, 1], [], []>} : vector<16x32xf32>, vector<32x32xf32>, vector<16x32xf32> -> vector<16x32xf32>
    %170 = vector.broadcast %5 : vector<1x32xf32> to vector<16x32xf32>
    %171 = arith.addf %169, %170 : vector<16x32xf32>
    %172 = arith.addf %171, %0 : vector<16x32xf32>
    %cst_49 = arith.constant dense<0.000000e+00> : vector<16xf32>
    %173 = vector.multi_reduction <add>, %172, %cst_49 [1] : vector<16x32xf32> to vector<16xf32>
    %174 = vector.shape_cast %173 : vector<16xf32> to vector<16x1xf32>
    %cst_50 = arith.constant 3.200000e+01 : f32
    %175 = vector.broadcast %cst_50 : f32 to vector<16x1xf32>
    %176 = arith.divf %174, %175 : vector<16x1xf32>
    %177 = vector.broadcast %176 : vector<16x1xf32> to vector<16x32xf32>
    %178 = arith.subf %172, %177 : vector<16x32xf32>
    %179 = arith.mulf %178, %178 : vector<16x32xf32>
    %cst_51 = arith.constant dense<0.000000e+00> : vector<16xf32>
    %180 = vector.multi_reduction <add>, %179, %cst_51 [1] : vector<16x32xf32> to vector<16xf32>
    %181 = vector.shape_cast %180 : vector<16xf32> to vector<16x1xf32>
    %cst_52 = arith.constant 3.200000e+01 : f32
    %182 = vector.broadcast %cst_52 : f32 to vector<16x1xf32>
    %183 = arith.divf %181, %182 : vector<16x1xf32>
    %184 = vector.broadcast %176 : vector<16x1xf32> to vector<16x32xf32>
    %185 = arith.subf %172, %184 : vector<16x32xf32>
    %cst_53 = arith.constant 9.99999974E-6 : f32
    %186 = vector.broadcast %cst_53 : f32 to vector<16x1xf32>
    %187 = arith.addf %183, %186 : vector<16x1xf32>
    %188 = math.rsqrt %187 : vector<16x1xf32>
    %189 = vector.broadcast %188 : vector<16x1xf32> to vector<16x32xf32>
    %190 = arith.mulf %185, %189 : vector<16x32xf32>
    %191 = vector.broadcast %8 : vector<1x32xf32> to vector<16x32xf32>
    %192 = arith.mulf %190, %191 : vector<16x32xf32>
    %193 = vector.broadcast %9 : vector<1x32xf32> to vector<16x32xf32>
    %194 = arith.addf %192, %193 : vector<16x32xf32>
    %cst_54 = arith.constant dense<0.000000e+00> : vector<16x32xf32>
    %195 = tpu.matmul %194, %13, %cst_54 {dimension_numbers = #tpu.dot_dimension_numbers<[1], [0], [0], [1], [0, 0, 1, 1], [], []>} : vector<16x32xf32>, vector<32x32xf32>, vector<16x32xf32> -> vector<16x32xf32>
    %196 = arith.addf %195, %194 : vector<16x32xf32>
    %c0_55 = arith.constant 0 : index
    %c0_56 = arith.constant 0 : index
    %197 = vector.load %arg4[%c0_55, %c0_56] : memref<16x32xf32, #tpu.memory_space<vmem>>, vector<16x32xf32>
    tpu.vector_store %arg4[%c0_55, %c0_56], %196 {strides = array<i32>} : memref<16x32xf32, #tpu.memory_space<vmem>>, vector<16x32xf32>,
    return
  }
  func.func @transform_0(%arg0: i32) -> (i32, i32) {
    %c0_i32 = arith.constant 0 : i32
    %c0_i32_0 = arith.constant 0 : i32
    %c0_i32_1 = arith.constant 0 : i32
    return %c0_i32, %c0_i32_0 : i32, i32
  }
  func.func @transform_1(%arg0: i32) -> (i32, i32) {
    %c0_i32 = arith.constant 0 : i32
    %c0_i32_0 = arith.constant 0 : i32
    %c0_i32_1 = arith.constant 0 : i32
    return %c0_i32, %c0_i32_0 : i32, i32
  }
  func.func @transform_2(%arg0: i32) -> (i32, i32) {
    %c0_i32 = arith.constant 0 : i32
    %c0_i32_0 = arith.constant 0 : i32
    %c0_i32_1 = arith.constant 0 : i32
    return %c0_i32, %c0_i32_0 : i32, i32
  }
  func.func @transform_3(%arg0: i32) -> (i32, i32) {
    %c0_i32 = arith.constant 0 : i32
    %c0_i32_0 = arith.constant 0 : i32
    %c0_i32_1 = arith.constant 0 : i32
    return %c0_i32, %c0_i32_0 : i32, i32
  }
}

</mosaic_0001>

<bundles_post_ra>
// kernel: tpu_custom_call.1
= control target key start
LH: loop header
LB: loop body
LE: loop exit
PB: predicated region body
PF: predicated region fallthrough
CT: control target
= control target key end

     0   :  { %8 = vsyncpa [#allocation4], 0  ;;  %s1242_s0 = inlined_call_operand.hbm [shape: f32[16,32], index: 0, kind: input, shape index: {}]   ;;  %s1243_s1 = inlined_call_operand.hbm [shape: f32[32,160], index: 1, kind: input, shape index: {}]   ;;  %s1244_s2 = inlined_call_operand.hbm [shape: f32[8,32], index: 2, kind: input, shape index: {}]   ;;  %s1245_s3 = inlined_call_operand.hbm [shape: f32[16,32], index: 3, kind: output, shape index: {}]  }
   0x1   :  { %9 = vsyncpa [#allocation7], 0  ;;  %s28_s14 = sshll.u32 %s1243_s1, 4  ;;  %s29_s14 = int_to_ptr.hbm [resolvable:$true] %s28_s14 }
   0x2   :  { %10 = vsyncpa [#allocation5], 0  ;;  %s1049_s15 = smov [#allocation6]   ;;  %s15_s19 = sshll.u32 %s1242_s0, 4  ;;  %s16_s19 = int_to_ptr.hbm [resolvable:$true] %s15_s19 }
   0x3   :  { %s30_s16 = sshll.u32 %s1049_s15, 4  ;;  %s1050_s20 = smov 256   ;;  %s31_s16 = int_to_ptr.vmem [resolvable:$true] %s30_s16 }
   0x4   :  { %s1051_s21 = smov 16   ;;  %s1052_s22 = smov [#allocation3]  }
   0x5   :  { %36 = dma.hbm_to_vmem [thread:$0]  %s29_s14, 1024, %s31_s16, [#allocation7], %s1050_s20, %s1050_s20, %s1051_s21  }
   0x6   :  { %s17_s23 = sshll.u32 %s1052_s22, 4  ;;  %s1053_s24 = smov 128   ;;  %s18_s23 = int_to_ptr.vmem [resolvable:$true] %s17_s23 }
   0x7   :  { %s1054_s25 = smov 8   ;;  %s42_s27 = sshll.u32 %s1244_s2, 4  ;;  %s43_s27 = int_to_ptr.hbm [resolvable:$true] %s42_s27 }
   0x8   :  { %23 = dma.hbm_to_vmem [thread:$0]  %s16_s19, 256, %s18_s23, [#allocation4], %s1053_s24, %s1053_s24, %s1054_s25  }
   0x9   :  { %s1055_s0 = smov [#allocation8]  }
   0xa   :  { %s44_s28 = sshll.u32 %s1055_s0, 4  ;;  %s45_s28 = int_to_ptr.vmem [resolvable:$true] %s44_s28 }
   0xb   :  { %47 = dma.hbm_to_vmem [thread:$0]  %s43_s27, 128, %s45_s28, [#allocation7]  }
   0xc   :  { %1043 = dma.done.wait [#allocation4], 256  }
   0xd   :  { %1044 = vsyncadd [#allocation4], 4294967040 }
   0xe   :  { %1045 = dma.done.wait [#allocation7], 1152  }
   0xf   :  { %1046 = vsyncadd [#allocation7], 4294966144  ;;  %vm71_vm0 = vcmask 261120   ;;  %v1105_v0 = vld [vmem:[#allocation3 + $0x8] sm:$0xff]  ;;  %v1109_v2 = vld [vmem:[#allocation3] sm:$0xff]  ;;  %v1056_v4 = vmov 32.0  }
  0x10   :  { %v75_v1 = vsel %vm71_vm0, %v1105_v0, 0.0  ;;  %v72_v3 = vsel %vm71_vm0, %v1109_v2, 0.0  ;;  %905 = vrcp.f32 %v1056_v4  ;;  %v1121_v21 = vld [vmem:[#allocation6 + $0x30] sm:$0xff]  ;;  %v1125_v22 = vld [vmem:[#allocation6 + $0x20] sm:$0xff]  ;;  %s1057_s2 = smov 32   ;;  %s1058_s29 = smov 96  }
  0x11   :  { %76 = vadd.xlane.f32.xlu0 %v75_v1  ;;  %848 = vmatpush.msra.mxu3 %v1121_v21  ;;  %v1129_v23 = vld [vmem:[#allocation6 + $0x10] sm:$0xff]  ;;  %v1133_v24 = vld [vmem:[#allocation6] sm:$0xff]  ;;  %s1059_s30 = smov 88   ;;  %s1060_s4 = smov 104   ;;  %vm226_vm8 = vcmask 64512   ;;  %vm260_vm10 = vcmask 130048  }
  0x12   :  { %147 = vmatpush.msra.mxu0 %v1121_v21  ;;  %v1138_v28 = vld [vmem:[#allocation8] sm:$0xff]  ;;  %s1061_s5 = smov 72   ;;  %s1062_s6 = smov 120   ;;  %vm438_vm12 = vcmask 130112   ;;  %vm551_vm13 = vcmask 195712   ;;  %vm664_vm14 = vcmask 261312  }
  0x13   :  { %849 = vmatpush.msra.mxu3 %v1125_v22  ;;  %v161_v29 = vperm.slane %v1138_v28, 1  ;;  %v123_v41 = vperm.slane %v1138_v28, 4  ;;  %v126_v45 = vperm.slane %v1138_v28, 5  ;;  %v158_v60 = vperm.slane %v1138_v28, 0  ;;  %s1063_s7 = smov 80   ;;  %s1064_s8 = smov 64  }
  0x14   :  { %148 = vmatpush.msra.mxu0 %v1125_v22  ;;  %v168_v63 = vperm.slane %v1138_v28, 2  ;;  %s1065_s9 = smov 112   ;;  %s1066_s10 = smov 56  }
  0x15   :  { %850 = vmatpush.msra.mxu3 %v1129_v23  ;;  %163 = vrot.lane.b32.xlu2 %v161_v29, %s1057_s2  ;;  %s1068_s11 = smov 48   ;;  %s1069_s12 = smov 40  }
  0x16   :  { %v906_v5 = vpop.eup %905  ;;  %149 = vmatpush.msra.mxu0 %v1129_v23  ;;  %s1070_s13 = smov 24   ;;  %s1071_s14 = smov [#allocation9]  }
  0x17   :  { %v79_v6 = vmul.f32 32.0, %v906_v5  ;;  %vm83_vm1 = vweird.f32 %v906_v5  ;;  %851 = vmatpush.msra.mxu3 %v1133_v24  ;;  %s802_s15 = sshll.u32 %s1071_s14, 4  ;;  %s804_s18 = sshll.u32 %s1245_s3, 4  ;;  %s803_s15 = int_to_ptr.vmem [resolvable:$true] %s802_s15  ;;  %s805_s18 = int_to_ptr.hbm [resolvable:$true] %s804_s18 }
  0x18   :  { %150 = vmatpush.msra.mxu0 %v1133_v24 }
  0x19   :  { %73 = vadd.xlane.f32.xlu0 %v72_v3  ;;  %v80_v7 = vsub.f32 1.0, %v79_v6 }
  0x1b   :  { %v81_v8 = vmul.f32 %v906_v5, %v80_v7 }
  0x1d   :  { %v82_v9 = vadd.f32 %v906_v5, %v81_v8 }
  0x1f   :  { %v1113_v10 = vsel %vm83_vm1, %v906_v5, %v82_v9 }
  0x6f   :  { %v164_v55 = vpop.permute.xlu2 %163 }
  0x84   :  { %v77_v11 = vpop.xlane.xlu0 %76 }
  0x85   :  { %v86_v12 = vmul.f32 %v1113_v10, %v77_v11 }
  0x87   :  { %v88_v13 = vsub.f32 %v1105_v0, %v86_v12 }
  0x89   :  { %v90_v14 = vmul.f32 %v88_v13, %v88_v13 }
  0x8b   :  { %v94_v15 = vsel %vm71_vm0, %v90_v14, 0.0 }
  0x8c   :  { %95 = vadd.xlane.f32.xlu1 %v94_v15  ;;  %v74_v16 = vpop.xlane.xlu0 %73 }
  0x8d   :  { %v85_v17 = vmul.f32 %v1113_v10, %v74_v16 }
  0x8f   :  { %v87_v18 = vsub.f32 %v1109_v2, %v85_v17 }
  0x91   :  { %v89_v19 = vmul.f32 %v87_v18, %v87_v18 }
  0x93   :  { %v91_v20 = vsel %vm71_vm0, %v89_v19, 0.0 }
  0x94   :  { %92 = vadd.xlane.f32.xlu1 %v91_v20 }
  0xff   :  { %v96_v25 = vpop.xlane.xlu1 %95 }
 0x100   :  { %v98_v26 = vmul.f32 %v96_v25, %v1113_v10  ;;  %v175_v25 = vlaneseq }
 0x102   :  { %v100_v27 = vadd.f32 1e-05, %v98_v26  ;;  %v176_v26 = vshrl.u32 %v175_v25, 7 }
 0x104   :  { %907 = vrsqrt.f32 %v100_v27  ;;  %vm117_vm3 = vweird.f32 %v100_v27  ;;  %v184_v29 = vand.u32 1, %v176_v26 }
 0x107   :  { %v93_v30 = vpop.xlane.xlu1 %92 }
 0x108   :  { %v97_v31 = vmul.f32 %v93_v30, %v1113_v10 }
 0x10a   :  { %v908_v32 = vpop.eup %907  ;;  %v99_v33 = vadd.f32 1e-05, %v97_v31  ;;  %v177_v31 = vadd.s32 8, %v176_v26 }
 0x10b   :  { %v112_v34 = vmul.f32 %v908_v32, %v100_v27  ;;  %vm118_vm2 = vweird.f32 %v908_v32  ;;  %v179_v27 = vand.u32 127, %v175_v25 }
 0x10c   :  { %909 = vrsqrt.f32 %v99_v33  ;;  %vm119_vm4 = vmor %vm117_vm3, %vm118_vm2  ;;  %vm107_vm6 = vweird.f32 %v99_v33 }
 0x10d   :  { %v113_v35 = vmul.f32 %v908_v32, %v112_v34  ;;  %v208_v30 = vand.u32 1, %v179_v27  ;;  %v191_v34 = vand.u32 1, %v177_v31 }
 0x10f   :  { %v114_v36 = vmul.f32 0.5, %v113_v35  ;;  %vm216_vm9 = vcmp.eq.s32.totalorder %v184_v29, %v208_v30  ;;  %vm217_vm11 = vcmp.eq.s32.totalorder %v191_v34, %v208_v30 }
 0x111   :  { %v115_v37 = vsub.f32 1.5, %v114_v36 }
 0x112   :  { %v910_v38 = vpop.eup %909 }
 0x113   :  { %v116_v39 = vmul.f32 %v908_v32, %v115_v37  ;;  %v102_v40 = vmul.f32 %v910_v38, %v99_v33  ;;  %vm108_vm5 = vweird.f32 %v910_v38 }
 0x114   :  { %vm109_vm7 = vmor %vm107_vm6, %vm108_vm5 }
 0x115   :  { %v120_v42 = vsel %vm119_vm4, %v908_v32, %v116_v39  ;;  %v103_v43 = vmul.f32 %v910_v38, %v102_v40  ;;  %v1067_v32 = vmov -1e+30  }
 0x116   :  { %v122_v44 = vmul.f32 %v120_v42, %v88_v13  ;;  %v218_v33 = vsel %vm216_vm9, 0.0, %v1067_v32 }
 0x117   :  { %v104_v46 = vmul.f32 0.5, %v103_v43 }
 0x118   :  { %v125_v47 = vmul.f32 %v123_v41, %v122_v44 }
 0x119   :  { %v105_v48 = vsub.f32 1.5, %v104_v46 }
 0x11a   :  { %v128_v49 = vadd.f32 %v126_v45, %v125_v47 }
 0x11b   :  { %v106_v50 = vmul.f32 %v910_v38, %v105_v48 }
 0x11c   :  { %819 = vmatmul.msk.f32.vlgmr.msra.gmra.mxu3 %vm71_vm0, %v128_v49 }
 0x11d   :  { %v110_v51 = vsel %vm109_vm7, %v910_v38, %v106_v50  ;;  %v219_v38 = vsel %vm217_vm11, 0.0, %v1067_v32 }
 0x11e   :  { %v121_v52 = vmul.f32 %v110_v51, %v87_v18 }
 0x120   :  { %v124_v53 = vmul.f32 %v123_v41, %v121_v52 }
 0x122   :  { %v127_v54 = vadd.f32 %v126_v45, %v124_v53 }
 0x124   :  { %818 = vmatmul.msk.f32.vlgmr.msra.gmra.mxu0 %vm71_vm0, %v127_v54 }
 0x19f   :  { %v155_v56 = vpop.f32.mrf.mxu3 }
 0x1a0   :  { %v167_v57 = vadd.f32 %v164_v55, %v155_v56  ;;  %v160_v62 = vadd.f32 %v158_v60, %v155_v56 }
 0x1a1   :  { %v152_v58 = vpop.f32.mrf.mxu0 }
 0x1a2   :  { %v166_v59 = vadd.f32 %v164_v55, %v152_v58  ;;  %224 = vrot.lane.b32.xlu2 %v167_v57, %s1058_s29  ;;  %334 = vrot.lane.b32.xlu1 %v167_v57, %s1059_s30  ;;  %v159_v61 = vadd.f32 %v158_v60, %v152_v58 }
 0x1a4   :  { %222 = vrot.lane.b32.xlu0 %v166_v59, %s1058_s29 }
 0x1aa   :  { %332 = vrot.lane.b32.xlu2 %v166_v59, %s1059_s30  ;;  %554 = vrot.lane.b32.xlu1 %v159_v61, %s1060_s4 }
 0x1ac   :  { %560 = vrot.lane.b32.xlu0 %v167_v57, %s1061_s5 }
 0x1b2   :  { %556 = vrot.lane.b32.xlu1 %v160_v62, %s1060_s4  ;;  %328 = vrot.lane.b32.xlu2 %v159_v61, %s1062_s6 }
 0x1b4   :  { %447 = vrot.lane.b32.xlu0 %v167_v57, %s1063_s7 }
 0x1ba   :  { %170 = vrot.lane.b32.xlu1 %v168_v63, %s1064_s8  ;;  %330 = vrot.lane.b32.xlu2 %v160_v62, %s1062_s6 }
 0x1bc   :  { %441 = vrot.lane.b32.xlu0 %v159_v61, %s1065_s9 }
 0x1c2   :  { %558 = vrot.lane.b32.xlu2 %v166_v59, %s1061_s5 }
 0x1ca   :  { %445 = vrot.lane.b32.xlu2 %v166_v59, %s1063_s7 }
 0x1d2   :  { %443 = vrot.lane.b32.xlu2 %v160_v62, %s1065_s9 }
 0x1fc   :  { %v225_v1 = vpop.permute.xlu2 %224 }
 0x1fd   :  { %820 = vmatpush.xpose.msk.msra.mxu1 %vm226_vm8, %v225_v1 }
 0x204   :  { %v333_v3 = vpop.permute.xlu2 %332 }
 0x20c   :  { %v329_v4 = vpop.permute.xlu2 %328 }
 0x214   :  { %v335_v5 = vpop.permute.xlu1 %334  ;;  %v331_v6 = vpop.permute.xlu2 %330 }
 0x215   :  { %826 = vmatpush.xpose.msk.msrb.mxu3 %vm226_vm8, %v335_v5 }
 0x216   :  { %v223_v7 = vpop.permute.xlu0 %222 }
 0x217   :  { %821 = vmatpush.xpose.msk.msra.mxu1 %vm226_vm8, %v223_v7 }
 0x219   :  { %827 = vmatpush.xpose.msk.msrb.mxu3 %vm226_vm8, %v333_v3 }
 0x21a   :  { %822 = vmatmul.msk.f32.vlgmr.msra.gmra.mxu1 %vm226_vm8, %v159_v61 }
 0x21c   :  { %828 = vmatmul.msk.f32.vlgmr.msrb.gmra.mxu3 %vm226_vm8, %v329_v4  ;;  %v555_v8 = vpop.permute.xlu1 %554  ;;  %v559_v11 = vpop.permute.xlu2 %558 }
 0x21e   :  { %v561_v9 = vpop.permute.xlu0 %560 }
 0x21f   :  { %838 = vmatpush.xpose.msk.msra.mxu3 %vm226_vm8, %v561_v9 }
 0x222   :  { %823 = vmatmul.msk.f32.gmra.mxu1 %vm226_vm8, %v160_v62 }
 0x223   :  { %839 = vmatpush.xpose.msk.msra.mxu3 %vm226_vm8, %v559_v11 }
 0x224   :  { %829 = vmatmul.msk.f32.gmra.mxu3 %vm226_vm8, %v331_v6  ;;  %v557_v12 = vpop.permute.xlu1 %556  ;;  %v446_v14 = vpop.permute.xlu2 %445 }
 0x226   :  { %v448_v13 = vpop.permute.xlu0 %447 }
 0x227   :  { %832 = vmatpush.xpose.msk.msrb.mxu0 %vm226_vm8, %v448_v13 }
 0x22b   :  { %833 = vmatpush.xpose.msk.msrb.mxu0 %vm226_vm8, %v446_v14 }
 0x22c   :  { %840 = vmatmul.msk.f32.vlgmr.msra.gmra.mxu3 %vm226_vm8, %v555_v8  ;;  %v171_v15 = vpop.permute.xlu1 %170  ;;  %v444_v20 = vpop.permute.xlu2 %443 }
 0x22d   :  { %v173_v16 = vadd.f32 %v171_v15, %v152_v58  ;;  %v174_v17 = vadd.f32 %v171_v15, %v155_v56 }
 0x22e   :  { %v442_v18 = vpop.permute.xlu0 %441 }
 0x22f   :  { %834 = vmatmul.msk.f32.vlgmr.msrb.gmra.mxu0 %vm226_vm8, %v442_v18  ;;  %v1164_v19 = vpack.i.bf16 %v173_v16, %v174_v17 }
 0x231   :  { %881 = vrot.lane.b32.xlu2 %v1164_v19, %s1066_s10  ;;  %876 = vrot.lane.b32.xlu1 %v1164_v19, %s1064_s8 }
 0x234   :  { %841 = vmatmul.msk.f32.gmra.mxu3 %vm226_vm8, %v557_v12 }
 0x237   :  { %835 = vmatmul.msk.f32.gmra.mxu0 %vm226_vm8, %v444_v20 }
 0x28b   :  { %v882_v44 = vpop.permute.xlu2 %881 }
 0x28c   :  { %v883_v48 = vunpack.i.l.bf16 %v882_v44  ;;  %v884_v50 = vunpack.i.h.bf16 %v882_v44 }
 0x297   :  { %v254_v35 = vpop.f32.mrf.mxu1 }
 0x298   :  { %v255_v36 = vadd.f32 %v254_v35, %v218_v33 }
 0x29a   :  { %v261_v37 = vsel %vm260_vm10, %v255_v36, -inf }
 0x29b   :  { %262 = vmax.xlane.f32.xlu0 %v261_v37 }
 0x29f   :  { %v257_v39 = vpop.f32.mrf.mxu1  ;;  %v361_v40 = vpop.f32.mrf.mxu3 }
 0x2a0   :  { %v258_v41 = vadd.f32 %v257_v39, %v219_v38  ;;  %v362_v58 = vadd.f32 %v361_v40, %v218_v33 }
 0x2a2   :  { %v264_v42 = vsel %vm260_vm10, %v258_v41, -inf  ;;  %v367_v60 = vsel %vm260_vm10, %v362_v58, -inf }
 0x2a3   :  { %265 = vmax.xlane.f32.xlu2 %v264_v42  ;;  %v877_v43 = vpop.permute.xlu1 %876 }
 0x2a4   :  { %v878_v45 = vunpack.i.l.bf16 %v877_v43  ;;  %v879_v46 = vunpack.i.h.bf16 %v877_v43 }
 0x2a6   :  { %315 = vmatpush.msra.mxu2 %v878_v45 }
 0x2a7   :  { %v364_v47 = vpop.f32.mrf.mxu3 }
 0x2a8   :  { %v365_v49 = vadd.f32 %v364_v47, %v219_v38  ;;  %316 = vmatpush.msra.mxu2 %v879_v46 }
 0x2aa   :  { %419 = vmatpush.msrb.mxu2 %v883_v48  ;;  %v370_v51 = vsel %vm260_vm10, %v365_v49, -inf }
 0x2ab   :  { %371 = vmax.xlane.f32.xlu0 %v370_v51 }
 0x2ac   :  { %420 = vmatpush.msrb.mxu2 %v884_v50  ;;  %v474_v52 = vpop.f32.mrf.mxu0 }
 0x2ad   :  { %v475_v53 = vadd.f32 %v474_v52, %v218_v33 }
 0x2af   :  { %v587_v54 = vpop.f32.mrf.mxu3  ;;  %v480_v55 = vsel %vm260_vm10, %v475_v53, -inf }
 0x2b0   :  { %v1175_v56 = vadd.f32 %v587_v54, %v218_v33  ;;  %481 = vmax.xlane.f32.xlu1 %v480_v55 }
 0x2b2   :  { %v593_v57 = vsel %vm260_vm10, %v1175_v56, -inf }
 0x2b3   :  { %594 = vmax.xlane.f32.xlu0 %v593_v57 }
 0x2b4   :  { %v477_v63 = vpop.f32.mrf.mxu0 }
 0x2b5   :  { %v478_v1 = vadd.f32 %v477_v63, %v219_v38 }
 0x2b7   :  { %v590_v59 = vpop.f32.mrf.mxu3  ;;  %v483_v3 = vsel %vm260_vm10, %v478_v1, -inf }
 0x2b8   :  { %v1180_v61 = vadd.f32 %v590_v59, %v219_v38  ;;  %368 = vmax.xlane.f32.xlu1 %v367_v60 }
 0x2ba   :  { %v596_v62 = vsel %vm260_vm10, %v1180_v61, -inf }
 0x2bb   :  { %597 = vmax.xlane.f32.xlu0 %v596_v62  ;;  %891 = vrot.lane.b32.xlu2 %v1164_v19, %s1068_s11 }
 0x2c3   :  { %484 = vmax.xlane.f32.xlu0 %v483_v3 }
 0x2d1   :  { %886 = vrot.lane.b32.xlu1 %v1164_v19, %s1069_s12 }
 0x30e   :  { %v263_v4 = vpop.xlane.xlu0 %262 }
 0x30f   :  { %v267_v5 = vsub.f32 %v255_v36, %v263_v4 }
 0x311   :  { %v269_v6 = vmul.f32 1.442695, %v267_v5 }
 0x313   :  { %911 = vpow2.f32 %v269_v6 }
 0x316   :  { %v266_v7 = vpop.xlane.xlu2 %265 }
 0x317   :  { %v268_v8 = vsub.f32 %v258_v41, %v266_v7 }
 0x319   :  { %v912_v9 = vpop.eup %911  ;;  %v271_v11 = vmul.f32 1.442695, %v268_v8 }
 0x31a   :  { %824 = vmatmul.msk.f32.vlgmr.msra.gmra.mxu2 %vm260_vm10, %v912_v9  ;;  %v273_v51 = vsel %vm260_vm10, %v912_v9, 0.0 }
 0x31b   :  { %913 = vpow2.f32 %v271_v11 }
 0x31e   :  { %v372_v12 = vpop.xlane.xlu0 %371  ;;  %v892_v13 = vpop.permute.xlu2 %891 }
 0x31f   :  { %v374_v14 = vsub.f32 %v365_v49, %v372_v12  ;;  %v893_v15 = vunpack.i.l.bf16 %v892_v13  ;;  %v894_v18 = vunpack.i.h.bf16 %v892_v13 }
 0x321   :  { %v914_v16 = vpop.eup %913  ;;  %v377_v17 = vmul.f32 1.442695, %v374_v14  ;;  %532 = vmatpush.msrb.mxu1 %v893_v15 }
 0x322   :  { %825 = vmatmul.msk.f32.gmra.mxu2 %vm260_vm10, %v914_v16 }
 0x323   :  { %915 = vpow2.f32 %v377_v17  ;;  %533 = vmatpush.msrb.mxu1 %v894_v18  ;;  %v482_v19 = vpop.xlane.xlu1 %481 }
 0x324   :  { %v486_v20 = vsub.f32 %v475_v53, %v482_v19  ;;  %v276_v53 = vsel %vm260_vm10, %v914_v16, 0.0  ;;  %v900_v19 = vpack.i.bf16 %v1133_v24, %v1129_v23 }
 0x326   :  { %v488_v25 = vmul.f32 1.442695, %v486_v20  ;;  %v595_v26 = vpop.xlane.xlu0 %594 }
 0x327   :  { %v599_v41 = vsub.f32 %v1175_v56, %v595_v26  ;;  %v895_v56 = vpack.i.bf16 %v1125_v22, %v1121_v21 }
 0x328   :  { %917 = vpow2.f32 %v488_v25 }
 0x329   :  { %v916_v27 = vpop.eup %915  ;;  %v601_v42 = vmul.f32 1.442695, %v599_v41 }
 0x32a   :  { %v382_v29 = vsel %vm260_vm10, %v916_v27, 0.0 }
 0x32b   :  { %383 = vadd.xlane.f32.xlu1 %v382_v29  ;;  %v369_v30 = vpop.xlane.xlu1 %368 }
 0x32c   :  { %v373_v31 = vsub.f32 %v362_v58, %v369_v30 }
 0x32e   :  { %v918_v32 = vpop.eup %917  ;;  %v375_v33 = vmul.f32 1.442695, %v373_v31  ;;  %v598_v34 = vpop.xlane.xlu0 %597 }
 0x32f   :  { %836 = vmatmul.msk.f32.vlgmr.msrb.gmra.mxu1 %vm260_vm10, %v918_v32  ;;  %v492_v35 = vsel %vm260_vm10, %v918_v32, 0.0  ;;  %v600_v44 = vsub.f32 %v1180_v61, %v598_v34 }
 0x330   :  { %919 = vpow2.f32 %v375_v33  ;;  %493 = vadd.xlane.f32.xlu2 %v492_v35 }
 0x331   :  { %v603_v48 = vmul.f32 1.442695, %v600_v44 }
 0x336   :  { %v920_v36 = vpop.eup %919  ;;  %v485_v37 = vpop.xlane.xlu0 %484 }
 0x337   :  { %v487_v38 = vsub.f32 %v478_v1, %v485_v37  ;;  %830 = vmatmul.msk.f32.vlgmr.msrb.gmra.mxu2 %vm260_vm10, %v920_v36  ;;  %v379_v39 = vsel %vm260_vm10, %v920_v36, 0.0 }
 0x338   :  { %380 = vadd.xlane.f32.xlu0 %v379_v39 }
 0x339   :  { %v490_v40 = vmul.f32 1.442695, %v487_v38 }
 0x33b   :  { %921 = vpow2.f32 %v490_v40 }
 0x33c   :  { %923 = vpow2.f32 %v601_v42 }
 0x33d   :  { %925 = vpow2.f32 %v603_v48 }
 0x33f   :  { %831 = vmatmul.msk.f32.gmra.mxu2 %vm260_vm10, %v916_v27 }
 0x341   :  { %v922_v43 = vpop.eup %921 }
 0x342   :  { %837 = vmatmul.msk.f32.gmra.mxu1 %vm260_vm10, %v922_v43  ;;  %v495_v45 = vsel %vm260_vm10, %v922_v43, 0.0  ;;  %v924_v50 = vpop.eup %923 }
 0x343   :  { %496 = vadd.xlane.f32.xlu0 %v495_v45  ;;  %v887_v46 = vpop.permute.xlu1 %886  ;;  %v926_v52 = vpop.eup %925  ;;  %v605_v54 = vsel %vm260_vm10, %v924_v50, 0.0 }
 0x344   :  { %v888_v47 = vunpack.i.l.bf16 %v887_v46  ;;  %v889_v49 = vunpack.i.h.bf16 %v887_v46  ;;  %v608_v55 = vsel %vm260_vm10, %v926_v52, 0.0 }
 0x346   :  { %645 = vmatpush.msra.mxu2 %v888_v47 }
 0x348   :  { %646 = vmatpush.msra.mxu2 %v889_v49 }
 0x349   :  { %842 = vmatmul.msk.f32.vlgmr.msra.gmra.mxu2 %vm260_vm10, %v924_v50 }
 0x34b   :  { %274 = vadd.xlane.f32.xlu0 %v273_v51 }
 0x351   :  { %843 = vmatmul.msk.f32.gmra.mxu2 %vm260_vm10, %v926_v52 }
 0x353   :  { %277 = vadd.xlane.f32.xlu0 %v276_v53 }
 0x35b   :  { %606 = vadd.xlane.f32.xlu0 %v605_v54 }
 0x363   :  { %609 = vadd.xlane.f32.xlu0 %v608_v55 }
 0x377   :  { %896 = vrot.lane.b32.xlu0 %v895_v56, %s1057_s2 }
 0x39d   :  { %v318_v58 = vpop.f32.mrf.mxu2 }
 0x39e   :  { %v384_v62 = vpop.xlane.xlu1 %383 }
 0x3a3   :  { %v494_v57 = vpop.xlane.xlu2 %493 }
 0x3a4   :  { %927 = vrcp.f32 %v494_v57 }
 0x3a5   :  { %v321_v6 = vpop.f32.mrf.mxu2 }
 0x3aa   :  { %v928_v59 = vpop.eup %927 }
 0x3ab   :  { %v500_v60 = vmul.f32 %v928_v59, %v494_v57  ;;  %v381_v61 = vpop.xlane.xlu0 %380 }
 0x3ac   :  { %929 = vrcp.f32 %v381_v61  ;;  %v535_v3 = vpop.f32.mrf.mxu1 }
 0x3ad   :  { %v502_v63 = vsub.f32 2.0, %v500_v60  ;;  %931 = vrcp.f32 %v384_v62 }
 0x3af   :  { %v504_v1 = vmul.f32 %v928_v59, %v502_v63 }
 0x3b1   :  { %v541_v4 = vmul.f32 %v535_v3, %v504_v1 }
 0x3b2   :  { %v930_v5 = vpop.eup %929 }
 0x3b3   :  { %v387_v7 = vmul.f32 %v930_v5, %v381_v61  ;;  %545 = vrot.lane.b32.xlu0 %v541_v4, %s1051_s21  ;;  %v932_v22 = vpop.eup %931 }
 0x3b4   :  { %v388_v9 = vmul.f32 %v932_v22, %v384_v62 }
 0x3b5   :  { %v389_v21 = vsub.f32 2.0, %v387_v7 }
 0x3b6   :  { %v497_v8 = vpop.xlane.xlu0 %496  ;;  %v390_v15 = vsub.f32 2.0, %v388_v9 }
 0x3b7   :  { %933 = vrcp.f32 %v497_v8  ;;  %v391_v11 = vmul.f32 %v930_v5, %v389_v21 }
 0x3b8   :  { %v392_v18 = vmul.f32 %v932_v22, %v390_v15 }
 0x3ba   :  { %v422_v12 = vpop.f32.mrf.mxu2 }
 0x3bb   :  { %v428_v13 = vmul.f32 %v422_v12, %v391_v11 }
 0x3bd   :  { %v934_v14 = vpop.eup %933  ;;  %432 = vrot.lane.b32.xlu2 %v428_v13, %s1054_s25 }
 0x3be   :  { %v275_v16 = vpop.xlane.xlu0 %274  ;;  %v501_v17 = vmul.f32 %v934_v14, %v497_v8 }
 0x3bf   :  { %935 = vrcp.f32 %v275_v16  ;;  %v538_v34 = vpop.f32.mrf.mxu1 }
 0x3c0   :  { %v503_v25 = vsub.f32 2.0, %v501_v17 }
 0x3c2   :  { %v425_v20 = vpop.f32.mrf.mxu2  ;;  %v505_v31 = vmul.f32 %v934_v14, %v503_v25 }
 0x3c3   :  { %v429_v26 = vmul.f32 %v425_v20, %v392_v18 }
 0x3c4   :  { %v542_v35 = vmul.f32 %v538_v34, %v505_v31 }
 0x3c5   :  { %v936_v27 = vpop.eup %935  ;;  %901 = vrot.lane.b32.xlu2 %v900_v19, %s1057_s2  ;;  %434 = vrot.lane.b32.xlu0 %v429_v26, %s1054_s25 }
 0x3c6   :  { %v281_v29 = vmul.f32 %v936_v27, %v275_v16  ;;  %v278_v30 = vpop.xlane.xlu0 %277 }
 0x3c7   :  { %937 = vrcp.f32 %v278_v30 }
 0x3c8   :  { %v283_v32 = vsub.f32 2.0, %v281_v29  ;;  %v66_v29 = vld [vmem:[#allocation6 + $0x18] sm:$0xff] }
 0x3ca   :  { %v285_v33 = vmul.f32 %v936_v27, %v283_v32  ;;  %v68_v27 = vld [vmem:[#allocation6 + $0x28] sm:$0xff] }
 0x3cc   :  { %v324_v36 = vmul.f32 %v318_v58, %v285_v33  ;;  %v648_v45 = vpop.f32.mrf.mxu2 }
 0x3cd   :  { %v938_v37 = vpop.eup %937  ;;  %547 = vrot.lane.b32.xlu2 %v542_v35, %s1051_s21 }
 0x3ce   :  { %326 = vst.msk [vmem:[#allocation2] sm:$0xff] %vm226_vm8, %v324_v36  ;;  %v282_v23 = vmul.f32 %v938_v37, %v278_v30  ;;  %v607_v24 = vpop.xlane.xlu0 %606  ;;  %v64_v30 = vld [vmem:[#allocation6 + $0x8] sm:$0xff] }
 0x3cf   :  { %939 = vrcp.f32 %v607_v24 }
 0x3d0   :  { %v284_v38 = vsub.f32 2.0, %v282_v23 }
 0x3d2   :  { %v286_v39 = vmul.f32 %v938_v37, %v284_v38 }
 0x3d4   :  { %v325_v40 = vmul.f32 %v321_v6, %v286_v39  ;;  %v651_v52 = vpop.f32.mrf.mxu2  ;;  %v669_v6 = vperm.slane %v1138_v28, 3 }
 0x3d5   :  { %v940_v41 = vpop.eup %939 }
 0x3d6   :  { %327 = vst.msk [vmem:[#allocation2 + $0x8] sm:$0xff] %vm226_vm8, %v325_v40  ;;  %v613_v42 = vmul.f32 %v940_v41, %v607_v24  ;;  %v610_v43 = vpop.xlane.xlu0 %609 }
 0x3d7   :  { %941 = vrcp.f32 %v610_v43 }
 0x3d8   :  { %v615_v44 = vsub.f32 2.0, %v613_v42 }
 0x3da   :  { %v617_v46 = vmul.f32 %v940_v41, %v615_v44 }
 0x3dc   :  { %v654_v47 = vmul.f32 %v648_v45, %v617_v46 }
 0x3dd   :  { %v942_v48 = vpop.eup %941 }
 0x3de   :  { %v614_v49 = vmul.f32 %v942_v48, %v610_v43  ;;  %658 = vrot.lane.b32.xlu1 %v654_v47, %s1070_s13  ;;  %v761_v43 = vperm.slane %v1138_v28, 6 }
 0x3e0   :  { %v616_v50 = vsub.f32 2.0, %v614_v49 }
 0x3e2   :  { %v618_v51 = vmul.f32 %v942_v48, %v616_v50 }
 0x3e4   :  { %v655_v53 = vmul.f32 %v651_v52, %v618_v51 }
 0x3e6   :  { %660 = vrot.lane.b32.xlu1 %v655_v53, %s1070_s13 }
 0x3e9   :  { %v897_v54 = vpop.permute.xlu0 %896 }
 0x3ea   :  { %v899_v55 = vunpack.i.h.bf16 %v897_v54  ;;  %v898_v56 = vunpack.i.l.bf16 %v897_v54 }
 0x3ec   :  { %704 = vmatpush.msra.mxu0 %v898_v56 }
 0x3ee   :  { %705 = vmatpush.msra.mxu0 %v899_v55 }
 0x417   :  { %v433_v57 = vpop.permute.xlu2 %432 }
 0x418   :  { %439 = vst.msk [vmem:[#allocation2] sm:$0xff] %vm438_vm12, %v433_v57 }
 0x41f   :  { %v902_v58 = vpop.permute.xlu2 %901 }
 0x420   :  { %v904_v59 = vunpack.i.h.bf16 %v902_v58  ;;  %v903_v60 = vunpack.i.l.bf16 %v902_v58 }
 0x422   :  { %706 = vmatpush.msra.mxu0 %v903_v60 }
 0x424   :  { %707 = vmatpush.msra.mxu0 %v904_v59 }
 0x425   :  { %v546_v61 = vpop.permute.xlu0 %545 }
 0x426   :  { %552 = vst.msk [vmem:[#allocation2] sm:$0xff] %vm551_vm13, %v546_v61 }
 0x427   :  { %v548_v63 = vpop.permute.xlu2 %547 }
 0x437   :  { %v435_v62 = vpop.permute.xlu0 %434 }
 0x438   :  { %440 = vst.msk [vmem:[#allocation2 + $0x8] sm:$0xff] %vm438_vm12, %v435_v62 }
 0x439   :  { %553 = vst.msk [vmem:[#allocation2 + $0x8] sm:$0xff] %vm551_vm13, %v548_v63 }
 0x450   :  { %v659_v1 = vpop.permute.xlu1 %658 }
 0x451   :  { %665 = vst.msk [vmem:[#allocation2] sm:$0xff] %vm664_vm14, %v659_v1 }
 0x458   :  { %v661_v3 = vpop.permute.xlu1 %660  ;;  %v667_v4 = vld [vmem:[#allocation2] sm:$0xff] }
 0x459   :  { %666 = vst.msk [vmem:[#allocation2 + $0x8] sm:$0xff] %vm664_vm14, %v661_v3  ;;  %844 = vmatmul.msk.f32.vlgmr.msra.gmra.mxu0 %vm71_vm0, %v667_v4 }
 0x460   :  { %v668_v5 = vld [vmem:[#allocation2 + $0x8] sm:$0xff] }
 0x461   :  { %845 = vmatmul.msk.f32.gmra.mxu0 %vm71_vm0, %v668_v5 }
 0x4d6   :  { %v709_v7 = vpop.f32.mrf.mxu0 }
 0x4d7   :  { %v710_v21 = vadd.f32 %v709_v7, %v669_v6 }
 0x4d9   :  { %v715_v22 = vadd.f32 %v710_v21, %v1109_v2 }
 0x4db   :  { %v717_v8 = vsel %vm71_vm0, %v715_v22, 0.0 }
 0x4dc   :  { %718 = vadd.xlane.f32.xlu0 %v717_v8 }
 0x4de   :  { %v712_v9 = vpop.f32.mrf.mxu0 }
 0x4df   :  { %v713_v11 = vadd.f32 %v712_v9, %v669_v6 }
 0x4e1   :  { %v716_v12 = vadd.f32 %v713_v11, %v1105_v0  ;;  %v70_v0 = vld [vmem:[#allocation6 + $0x38] sm:$0xff] }
 0x4e2   :  { %785 = vmatpush.msra.mxu1 %v70_v0 }
 0x4e3   :  { %v720_v13 = vsel %vm71_vm0, %v716_v12, 0.0 }
 0x4e4   :  { %721 = vadd.xlane.f32.xlu2 %v720_v13  ;;  %786 = vmatpush.msra.mxu1 %v68_v27 }
 0x4e6   :  { %787 = vmatpush.msra.mxu1 %v66_v29 }
 0x4e8   :  { %788 = vmatpush.msra.mxu1 %v64_v30 }
 0x54f   :  { %v719_v14 = vpop.xlane.xlu0 %718 }
 0x550   :  { %v723_v15 = vmul.f32 %v719_v14, %v1113_v10 }
 0x552   :  { %v725_v16 = vsub.f32 %v715_v22, %v723_v15 }
 0x554   :  { %v727_v17 = vmul.f32 %v725_v16, %v725_v16 }
 0x556   :  { %v729_v18 = vsel %vm71_vm0, %v727_v17, 0.0 }
 0x557   :  { %730 = vadd.xlane.f32.xlu1 %v729_v18  ;;  %v722_v19 = vpop.xlane.xlu2 %721 }
 0x558   :  { %v724_v2 = vmul.f32 %v722_v19, %v1113_v10 }
 0x55a   :  { %v726_v20 = vsub.f32 %v716_v12, %v724_v2 }
 0x55c   :  { %v728_v25 = vmul.f32 %v726_v20, %v726_v20 }
 0x55e   :  { %v732_v26 = vsel %vm71_vm0, %v728_v25, 0.0 }
 0x55f   :  { %733 = vadd.xlane.f32.xlu2 %v732_v26 }
 0x5ca   :  { %v731_v31 = vpop.xlane.xlu1 %730 }
 0x5cb   :  { %v735_v32 = vmul.f32 %v731_v31, %v1113_v10 }
 0x5cd   :  { %v737_v33 = vadd.f32 1e-05, %v735_v32 }
 0x5cf   :  { %943 = vrsqrt.f32 %v737_v33  ;;  %vm745_vm1 = vweird.f32 %v737_v33 }
 0x5d2   :  { %v734_v34 = vpop.xlane.xlu2 %733 }
 0x5d3   :  { %v736_v35 = vmul.f32 %v734_v34, %v1113_v10  ;;  %v764_v10 = vperm.slane %v1138_v28, 7 }
 0x5d5   :  { %v944_v36 = vpop.eup %943  ;;  %v738_v37 = vadd.f32 1e-05, %v736_v35 }
 0x5d6   :  { %v740_v23 = vmul.f32 %v944_v36, %v737_v33  ;;  %vm746_vm15 = vweird.f32 %v944_v36 }
 0x5d7   :  { %945 = vrsqrt.f32 %v738_v37  ;;  %vm747_vm2 = vmor %vm745_vm1, %vm746_vm15  ;;  %vm755_vm4 = vweird.f32 %v738_v37 }
 0x5d8   :  { %v741_v24 = vmul.f32 %v944_v36, %v740_v23 }
 0x5da   :  { %v742_v38 = vmul.f32 0.5, %v741_v24 }
 0x5dc   :  { %v743_v39 = vsub.f32 1.5, %v742_v38 }
 0x5dd   :  { %v946_v40 = vpop.eup %945 }
 0x5de   :  { %v744_v41 = vmul.f32 %v944_v36, %v743_v39  ;;  %v750_v42 = vmul.f32 %v946_v40, %v738_v37  ;;  %vm756_vm3 = vweird.f32 %v946_v40 }
 0x5df   :  { %vm757_vm5 = vmor %vm755_vm4, %vm756_vm3 }
 0x5e0   :  { %v748_v44 = vsel %vm747_vm2, %v944_v36, %v744_v41  ;;  %v751_v45 = vmul.f32 %v946_v40, %v750_v42 }
 0x5e1   :  { %v759_v46 = vmul.f32 %v748_v44, %v725_v16 }
 0x5e2   :  { %v752_v47 = vmul.f32 0.5, %v751_v45 }
 0x5e3   :  { %v762_v48 = vmul.f32 %v761_v43, %v759_v46 }
 0x5e4   :  { %v753_v49 = vsub.f32 1.5, %v752_v47 }
 0x5e5   :  { %v765_v50 = vadd.f32 %v764_v10, %v762_v48 }
 0x5e6   :  { %v754_v51 = vmul.f32 %v946_v40, %v753_v49 }
 0x5e7   :  { %846 = vmatmul.msk.f32.vlgmr.msra.gmra.mxu1 %vm71_vm0, %v765_v50 }
 0x5e8   :  { %v758_v52 = vsel %vm757_vm5, %v946_v40, %v754_v51 }
 0x5e9   :  { %v760_v53 = vmul.f32 %v758_v52, %v726_v20 }
 0x5eb   :  { %v763_v54 = vmul.f32 %v761_v43, %v760_v53 }
 0x5ed   :  { %v766_v55 = vadd.f32 %v764_v10, %v763_v54 }
 0x5ef   :  { %847 = vmatmul.msk.f32.gmra.mxu1 %vm71_vm0, %v766_v55 }
 0x664   :  { %v790_v56 = vpop.f32.mrf.mxu1 }
 0x665   :  { %v791_v57 = vadd.f32 %v790_v56, %v765_v50 }
 0x667   :  { %796 = vst.msk [vmem:[#allocation9] sm:$0xff] %vm71_vm0, %v791_v57 }
 0x66c   :  { %v793_v28 = vpop.f32.mrf.mxu1 }
 0x66d   :  { %v794_v58 = vadd.f32 %v793_v28, %v766_v55 }
 0x66f   :  { %797 = vst.msk [vmem:[#allocation9 + $0x8] sm:$0xff] %vm71_vm0, %v794_v58 }
 0x670   :  { %810 = dma.vmem_to_hbm [thread:$0]  %s803_s15, 256, %s805_s18, [#allocation5], %s1053_s24, %s1053_s24, %s1054_s25  }
 0x671   :  { %1047 = dma.done.wait [#allocation5], 256  }
 0x672   :  { %1048 = vsyncadd [#allocation5], 4294967040 }
 0x673   :  { %815 = vsyncpa [#allocation4], 1 }
 0x674   :  { %816 = vsyncpa [#allocation7], 1 }
 0x675   :  { %817 = vsyncpa [#allocation5], 1 }

</bundles_post_ra>
